<compile_context>
chip_gen: v6e
topology: v6e:2x2x1
jax: 0.10.0
libtpu: 0.0.40
codegen_flags: <defaults>
</compile_context>

<pallas_src>
import jax
import jax.numpy as jnp
from jax.experimental import pallas as pl
from jax.experimental.pallas import tpu as pltpu

BN_EPS = 1e-5
LRELU_SLOPE = 0.2
VMEM_LIMIT_BYTES = 48 * 1024 * 1024  # under v7x's 64 MiB physical VMEM


def _round_up(x, m):
    return (x + m - 1) // m * m


# ---------- Pass 1: conv tiles (MXU) + per-sample per-channel sum / sumsq ----------
def conv_stats_kernel(p_ref, w_ref, y_ref, sum_ref, ssq_ref):
    j = pl.program_id(1)

    @pl.when(j == 0)
    def _():
        sum_ref[...] = jnp.zeros_like(sum_ref)
        ssq_ref[...] = jnp.zeros_like(ssq_ref)

    # [C_pad, K_pad] x [TM, K_pad] -> [C_pad, TM], contraction over K, f32 accumulate.
    acc = jax.lax.dot_general(
        w_ref[...], p_ref[...],
        dimension_numbers=(((1,), (1,)), ((), ())),
        preferred_element_type=jnp.float32)
    y_ref[...] = acc.astype(y_ref.dtype)  # bf16 intermediate: halves HBM round trip
    sum_ref[...] += jnp.sum(acc, axis=1, keepdims=True)
    ssq_ref[...] += jnp.sum(acc * acc, axis=1, keepdims=True)


# ---------- Pass 2: BatchNorm (global batch stats) + LeakyReLU, per tile ----------
def bn_lrelu_kernel(mean_ref, scale_ref, y_ref, o_ref):
    norm = (y_ref[...].astype(jnp.float32) - mean_ref[...]) * scale_ref[...]
    o_ref[...] = jnp.where(norm >= 0, norm, LRELU_SLOPE * norm).astype(o_ref.dtype)


def _im2col_reflect(x, kernel=4, stride=2, pad=1):
    """x: [N, C, H, W] -> patches [N, Ho*Wo, C*kernel*kernel] (channel-major K)."""
    n, c, h, w = x.shape
    xp = jnp.pad(x, ((0, 0), (0, 0), (pad, pad), (pad, pad)), mode="reflect")
    hp, wp = h + 2 * pad, w + 2 * pad
    ho = (hp - kernel) // stride + 1
    wo = (wp - kernel) // stride + 1
    cols = []
    for ki in range(kernel):
        for kj in range(kernel):
            cols.append(xp[:, :, ki:ki + stride * ho:stride, kj:kj + stride * wo:stride])
    patches = jnp.stack(cols, axis=2)                 # [N, C, k*k, Ho, Wo]
    patches = jnp.transpose(patches, (0, 3, 4, 1, 2))  # [N, Ho, Wo, C, k*k]
    return patches.reshape(n, ho * wo, c * kernel * kernel), (ho, wo)


def _pick_spatial_tile(msp, k_pad, c_pad):
    """Lane tile (multiple of 128) sized so the per-step VMEM footprint stays small."""
    budget = 16 * 1024 * 1024  # per-step working-set target, well under the 48 MiB limit
    per_row = 2 * (k_pad * 2) + 2 * (c_pad * 2) + 2 * (c_pad * 4)  # dbl-buffered in/out
    tm = max(128, min(2048, (budget // max(per_row, 1)) // 128 * 128))
    return min(tm, _round_up(msp, 128))


def cnn_block_forward(x, conv_w, stride=2):
    """x: [N, C_in, H, W] NCHW float32; conv_w: [C_out, C_in, 4, 4] (PyTorch layout)."""
    c_out, c_in, kh, kw = conv_w.shape
    n = x.shape[0]

    # Wrapper-side im2col, materialized in bf16 (see TODO at top of file).
    patches, (ho, wo) = _im2col_reflect(
        x.astype(jnp.bfloat16), kernel=kh, stride=stride, pad=1)
    msp = ho * wo
    k = c_in * kh * kw

    k_pad = _round_up(k, 128)      # lane-pad contraction dim (zero cols are exact)
    c_pad = _round_up(c_out, 8)    # channels only need sublane padding now
    tm = _pick_spatial_tile(msp, k_pad, c_pad)
    msp_pad = _round_up(msp, tm)
    n_sp_tiles = msp_pad // tm

    patches = jnp.pad(patches, ((0, 0), (0, msp_pad - msp), (0, k_pad - k)))
    w2d = conv_w.reshape(c_out, k).astype(jnp.bfloat16)
    w2d = jnp.pad(w2d, ((0, c_pad - c_out), (0, k_pad - k)))  # [C_pad, K_pad]

    # Pass 1: conv (bf16 intermediate) + per-sample per-channel sum / sumsq.
    conv_bf16, psum, pssq = pl.pallas_call(
        conv_stats_kernel,
        out_shape=(
            jax.ShapeDtypeStruct((n, c_pad, msp_pad), jnp.bfloat16),
            jax.ShapeDtypeStruct((n, c_pad, 1), jnp.float32),
            jax.ShapeDtypeStruct((n, c_pad, 1), jnp.float32),
        ),
        grid=(n, n_sp_tiles),
        in_specs=[
            pl.BlockSpec((None, tm, k_pad), lambda b, j: (b, j, 0)),
            pl.BlockSpec((c_pad, k_pad), lambda b, j: (0, 0)),
        ],
        out_specs=(
            pl.BlockSpec((None, c_pad, tm), lambda b, j: (b, 0, j)),
            pl.BlockSpec((None, c_pad, 1), lambda b, j: (b, 0, 0)),  # per-sample partial
            pl.BlockSpec((None, c_pad, 1), lambda b, j: (b, 0, 0)),  # per-sample partial
        ),
        compiler_params=pltpu.CompilerParams(
            dimension_semantics=("parallel", "arbitrary"),  # batch across v7x's 2 TCs
            vmem_limit_bytes=VMEM_LIMIT_BYTES,
        ),
    )(patches, w2d)

    # Tiny per-channel combine (N*C_pad values) + mean / rsqrt, once, in the wrapper.
    m_total = float(n * msp)  # padded rows/cols contribute exactly 0 to the sums
    ch_sum = psum.sum(axis=0)                                # (C_pad, 1)
    ch_ssq = pssq.sum(axis=0)                                # (C_pad, 1)
    mean = ch_sum / m_total
    var = jnp.maximum(ch_ssq / m_total - mean * mean, 0.0)   # clamp E[x^2]-E[x]^2
    scale = jax.lax.rsqrt(var + BN_EPS)

    # Pass 2: normalize + LeakyReLU, fully parallel over (batch, spatial tiles).
    out_pad = pl.pallas_call(
        bn_lrelu_kernel,
        out_shape=jax.ShapeDtypeStruct((n, c_pad, msp_pad), jnp.float32),
        grid=(n, n_sp_tiles),
        in_specs=[
            pl.BlockSpec((c_pad, 1), lambda b, j: (0, 0)),
            pl.BlockSpec((c_pad, 1), lambda b, j: (0, 0)),
            pl.BlockSpec((None, c_pad, tm), lambda b, j: (b, 0, j)),
        ],
        out_specs=pl.BlockSpec((None, c_pad, tm), lambda b, j: (b, 0, j)),
        compiler_params=pltpu.CompilerParams(
            dimension_semantics=("parallel", "parallel"),
            vmem_limit_bytes=VMEM_LIMIT_BYTES,
        ),
    )(mean, scale, conv_bf16)

    # Already NCHW-ordered: drop padding and split the spatial axis (no transpose).
    return out_pad[:, :c_out, :msp].reshape(n, c_out, ho, wo)


def reference_forward(x, conv_w, stride=2):
    """Pure-JAX f32 reference (reflect-pad conv, train-mode batch-norm, leaky relu)."""
    xp = jnp.pad(x, ((0, 0), (0, 0), (1, 1), (1, 1)), mode="reflect")
    y = jax.lax.conv_general_dilated(
        xp, conv_w, window_strides=(stride, stride), padding="VALID",
        dimension_numbers=("NCHW", "OIHW", "NCHW"))
    mean = jnp.mean(y, axis=(0, 2, 3), keepdims=True)
    var = jnp.mean((y - mean) ** 2, axis=(0, 2, 3), keepdims=True)
    yn = (y - mean) * jax.lax.rsqrt(var + BN_EPS)
    return jnp.where(yn >= 0, yn, LRELU_SLOPE * yn)


if __name__ == "__main__":
    key = jax.random.PRNGKey(0)
    kx, kw = jax.random.split(key)

    N, C_IN, C_OUT, H, W, STRIDE = 2, 4, 8, 16, 16, 2

    x = jax.random.normal(kx, (N, C_IN, H, W), dtype=jnp.float32)
    # nn.init.normal_(weight, mean=0, std=0.02); bias=False
    conv_w = 0.02 * jax.random.normal(kw, (C_OUT, C_IN, 4, 4), dtype=jnp.float32)

    out = cnn_block_forward(x, conv_w, stride=STRIDE)
    out = jax.block_until_ready(out)

    ref = reference_forward(x, conv_w, stride=STRIDE)
    assert out.shape == (N, C_OUT, H // STRIDE, W // STRIDE), out.shape
    # Tolerance relaxed vs f32 because conv operands and the conv intermediate are
    # bf16 (MXU accumulation and batch-norm statistics stay f32).
    err = float(jnp.max(jnp.abs(out - ref)))
    assert jnp.allclose(out, ref, atol=5e-2, rtol=5e-2), err

    print("KERNEL_OK")
</pallas_src>

<mosaic_0001>
module attributes {stable_mosaic.version = 11 : i64} {
  func.func @conv_stats_kernel(%arg0: i32, %arg1: i32, %arg2: memref<1x128x128xbf16, #tpu.memory_space<vmem>>, %arg3: memref<8x128xbf16, #tpu.memory_space<vmem>>, %arg4: memref<1x8x128xbf16, #tpu.memory_space<vmem>>, %arg5: memref<1x8x1xf32, #tpu.memory_space<vmem>>, %arg6: memref<1x8x1xf32, #tpu.memory_space<vmem>>) attributes {dimension_semantics = [#tpu.dimension_semantics<parallel>, #tpu.dimension_semantics<arbitrary>], iteration_bounds = array<i64: 2, 1>, scalar_prefetch = 0 : i64, scratch_operands = 0 : i64, tpu.core_type = #tpu.core_type<tc>, window_params = [{transform_indices = @transform_0, window_bounds = array<i64: 1, 128, 128>}, {pipeline_mode = #tpu.pipeline_mode<synchronous>, transform_indices = @transform_1, window_bounds = array<i64: 8, 128>}, {transform_indices = @transform_2, window_bounds = array<i64: 1, 8, 128>}, {transform_indices = @transform_3, window_bounds = array<i64: 1, 8, 1>}, {transform_indices = @transform_4, window_bounds = array<i64: 1, 8, 1>}]} {
    %c0_i32 = arith.constant 0 : i32
    %0 = arith.cmpi eq, %arg1, %c0_i32 : i32
    %1 = arith.extui %0 : i1 to i32
    %c0_i32_0 = arith.constant 0 : i32
    %2 = arith.cmpi ne, %1, %c0_i32_0 : i32
    scf.if %2 {
      %cst_22 = arith.constant 0.000000e+00 : f32
      %28 = vector.broadcast %cst_22 : f32 to vector<8x1xf32>
      %c0_23 = arith.constant 0 : index
      %c0_24 = arith.constant 0 : index
      %c0_25 = arith.constant 0 : index
      %29 = vector.load %arg5[%c0_23, %c0_24, %c0_25] : memref<1x8x1xf32, #tpu.memory_space<vmem>>, vector<1x8x1xf32>
      %30 = vector.shape_cast %29 : vector<1x8x1xf32> to vector<8x1xf32>
      %31 = vector.shape_cast %28 : vector<8x1xf32> to vector<1x8x1xf32>
      tpu.vector_store %arg5[%c0_23, %c0_24, %c0_25], %31 {strides = array<i32>} : memref<1x8x1xf32, #tpu.memory_space<vmem>>, vector<1x8x1xf32>,
      %cst_26 = arith.constant 0.000000e+00 : f32
      %32 = vector.broadcast %cst_26 : f32 to vector<8x1xf32>
      %c0_27 = arith.constant 0 : index
      %c0_28 = arith.constant 0 : index
      %c0_29 = arith.constant 0 : index
      %33 = vector.load %arg6[%c0_27, %c0_28, %c0_29] : memref<1x8x1xf32, #tpu.memory_space<vmem>>, vector<1x8x1xf32>
      %34 = vector.shape_cast %33 : vector<1x8x1xf32> to vector<8x1xf32>
      %35 = vector.shape_cast %32 : vector<8x1xf32> to vector<1x8x1xf32>
      tpu.vector_store %arg6[%c0_27, %c0_28, %c0_29], %35 {strides = array<i32>} : memref<1x8x1xf32, #tpu.memory_space<vmem>>, vector<1x8x1xf32>,
    } else {
    }
    %c0 = arith.constant 0 : index
    %c0_1 = arith.constant 0 : index
    %3 = vector.load %arg3[%c0, %c0_1] : memref<8x128xbf16, #tpu.memory_space<vmem>>, vector<8x128xbf16>
    %c0_2 = arith.constant 0 : index
    %c0_3 = arith.constant 0 : index
    %c0_4 = arith.constant 0 : index
    %4 = vector.load %arg2[%c0_2, %c0_3, %c0_4] : memref<1x128x128xbf16, #tpu.memory_space<vmem>>, vector<1x128x128xbf16>
    %5 = vector.shape_cast %4 : vector<1x128x128xbf16> to vector<128x128xbf16>
    %cst = arith.constant dense<0.000000e+00> : vector<8x128xf32>
    %6 = tpu.matmul %3, %5, %cst {dimension_numbers = #tpu.dot_dimension_numbers<[1], [1], [0], [0], [0, 0, 1, 0], [], []>} : vector<8x128xbf16>, vector<128x128xbf16>, vector<8x128xf32> -> vector<8x128xf32>
    %7 = arith.truncf %6 : vector<8x128xf32> to vector<8x128xbf16>
    %c0_5 = arith.constant 0 : index
    %c0_6 = arith.constant 0 : index
    %c0_7 = arith.constant 0 : index
    %8 = vector.load %arg4[%c0_5, %c0_6, %c0_7] : memref<1x8x128xbf16, #tpu.memory_space<vmem>>, vector<1x8x128xbf16>
    %9 = vector.shape_cast %8 : vector<1x8x128xbf16> to vector<8x128xbf16>
    %10 = vector.shape_cast %7 : vector<8x128xbf16> to vector<1x8x128xbf16>
    tpu.vector_store %arg4[%c0_5, %c0_6, %c0_7], %10 {strides = array<i32>} : memref<1x8x128xbf16, #tpu.memory_space<vmem>>, vector<1x8x128xbf16>,
    %c0_8 = arith.constant 0 : index
    %c0_9 = arith.constant 0 : index
    %c0_10 = arith.constant 0 : index
    %11 = vector.load %arg5[%c0_8, %c0_9, %c0_10] : memref<1x8x1xf32, #tpu.memory_space<vmem>>, vector<1x8x1xf32>
    %12 = vector.shape_cast %11 : vector<1x8x1xf32> to vector<8x1xf32>
    %cst_11 = arith.constant dense<0.000000e+00> : vector<8xf32>
    %13 = vector.multi_reduction <add>, %6, %cst_11 [1] : vector<8x128xf32> to vector<8xf32>
    %14 = vector.shape_cast %13 : vector<8xf32> to vector<8x1xf32>
    %15 = arith.addf %12, %14 : vector<8x1xf32>
    %c0_12 = arith.constant 0 : index
    %c0_13 = arith.constant 0 : index
    %c0_14 = arith.constant 0 : index
    %16 = vector.load %arg5[%c0_12, %c0_13, %c0_14] : memref<1x8x1xf32, #tpu.memory_space<vmem>>, vector<1x8x1xf32>
    %17 = vector.shape_cast %16 : vector<1x8x1xf32> to vector<8x1xf32>
    %18 = vector.shape_cast %15 : vector<8x1xf32> to vector<1x8x1xf32>
    tpu.vector_store %arg5[%c0_12, %c0_13, %c0_14], %18 {strides = array<i32>} : memref<1x8x1xf32, #tpu.memory_space<vmem>>, vector<1x8x1xf32>,
    %c0_15 = arith.constant 0 : index
    %c0_16 = arith.constant 0 : index
    %c0_17 = arith.constant 0 : index
    %19 = vector.load %arg6[%c0_15, %c0_16, %c0_17] : memref<1x8x1xf32, #tpu.memory_space<vmem>>, vector<1x8x1xf32>
    %20 = vector.shape_cast %19 : vector<1x8x1xf32> to vector<8x1xf32>
    %21 = arith.mulf %6, %6 : vector<8x128xf32>
    %cst_18 = arith.constant dense<0.000000e+00> : vector<8xf32>
    %22 = vector.multi_reduction <add>, %21, %cst_18 [1] : vector<8x128xf32> to vector<8xf32>
    %23 = vector.shape_cast %22 : vector<8xf32> to vector<8x1xf32>
    %24 = arith.addf %20, %23 : vector<8x1xf32>
    %c0_19 = arith.constant 0 : index
    %c0_20 = arith.constant 0 : index
    %c0_21 = arith.constant 0 : index
    %25 = vector.load %arg6[%c0_19, %c0_20, %c0_21] : memref<1x8x1xf32, #tpu.memory_space<vmem>>, vector<1x8x1xf32>
    %26 = vector.shape_cast %25 : vector<1x8x1xf32> to vector<8x1xf32>
    %27 = vector.shape_cast %24 : vector<8x1xf32> to vector<1x8x1xf32>
    tpu.vector_store %arg6[%c0_19, %c0_20, %c0_21], %27 {strides = array<i32>} : memref<1x8x1xf32, #tpu.memory_space<vmem>>, vector<1x8x1xf32>,
    return
  }
  func.func @transform_0(%arg0: i32, %arg1: i32) -> (i32, i32, i32) {
    %c0_i32 = arith.constant 0 : i32
    %c0_i32_0 = arith.constant 0 : i32
    return %arg0, %arg1, %c0_i32 : i32, i32, i32
  }
  func.func @transform_1(%arg0: i32, %arg1: i32) -> (i32, i32) {
    %c0_i32 = arith.constant 0 : i32
    %c0_i32_0 = arith.constant 0 : i32
    %c0_i32_1 = arith.constant 0 : i32
    return %c0_i32, %c0_i32_0 : i32, i32
  }
  func.func @transform_2(%arg0: i32, %arg1: i32) -> (i32, i32, i32) {
    %c0_i32 = arith.constant 0 : i32
    %c0_i32_0 = arith.constant 0 : i32
    return %arg0, %c0_i32, %arg1 : i32, i32, i32
  }
  func.func @transform_3(%arg0: i32, %arg1: i32) -> (i32, i32, i32) {
    %c0_i32 = arith.constant 0 : i32
    %c0_i32_0 = arith.constant 0 : i32
    %c0_i32_1 = arith.constant 0 : i32
    return %arg0, %c0_i32, %c0_i32_0 : i32, i32, i32
  }
  func.func @transform_4(%arg0: i32, %arg1: i32) -> (i32, i32, i32) {
    %c0_i32 = arith.constant 0 : i32
    %c0_i32_0 = arith.constant 0 : i32
    %c0_i32_1 = arith.constant 0 : i32
    return %arg0, %c0_i32, %c0_i32_0 : i32, i32, i32
  }
}

</mosaic_0001>

<bundles_post_ra>
// kernel: tpu_custom_call.1
= control target key start
LH: loop header
LB: loop body
LE: loop exit
PB: predicated region body
PF: predicated region fallthrough
CT: control target
= control target key end

     0   :  { %s1064_s0 = inlined_call_operand.hbm [shape: bf16[2,128,128], index: 0, kind: input, shape index: {}]   ;;  %s1065_s1 = inlined_call_operand.hbm [shape: bf16[8,128], index: 1, kind: input, shape index: {}]   ;;  %s1066_s2 = inlined_call_operand.hbm [shape: bf16[2,8,128], index: 2, kind: output, shape index: {0}]   ;;  %s1067_s3 = inlined_call_operand.vmem [shape: f32[2,8,1], index: 3, kind: output, shape index: {1}]   ;;  %s1068_s4 = inlined_call_operand.vmem [shape: f32[2,8,1], index: 4, kind: output, shape index: {2}]  }
   0x1   :  { %1072 = sst [smem:[#allocation12_spill]] %s1065_s1 }
   0x2   :  { %10 = vsyncpa [#allocation3], 0 }
   0x3   :  { %12 = vsyncpa [#allocation3 + $0x1], 0 }
   0x4   :  { %13 = vsyncpa [#allocation6], 0 }
   0x5   :  { %14 = vsyncpa [#allocation4], 0 }
   0x6   :  { %16 = vsyncpa [#allocation4 + $0x1], 0  ;;  %s878_s15 = smov 0   ;;  %s880_s16 = smov 0  }
   0x7   :  { %s882_s17 = smov 0   ;;  %s884_s18 = smov 0  }
   0x8   :  { %s886_s19 = smov 0   ;;  %s888_s20 = smov 0  }
   0x9 LB: > { %s565_s21 = sadd.s32 4294967295, %s844_s20   ;;  %s566_s22 = sadd.s32 4294967294, %s844_s20   ;;  %s844_s20 = sphi %s888_s20, %s22_s20   ;;  %s840_s19 = sphi %s886_s19, %s1092_s19   ;;  %s836_s18 = sphi %s884_s18, %s1091_s18   ;;  %s832_s17 = sphi %s882_s17, %s1090_s17   ;;  %s828_s16 = sphi %s880_s16, %s1089_s16   ;;  %s824_s15 = sphi %s878_s15, %s1088_s15  }
   0xa   : > { %s43_s23 = sadd.s32 1, %s832_s17  ;;  %p50_p0 = scmp.ne.s32.totalorder %s832_s17, %s828_s16 }
   0xb   : > { %p51_p1 = scmp.eq.s32.totalorder %s844_s20, 0  ;;  %p56_p2 = scmp.ne.s32.totalorder %s828_s16, %s824_s15 }
   0xc   : > { %p916_p3 = scmp.eq.s32.totalorder %s565_s21, 0  ;;  %p103_p4 = scmp.eq.s32.totalorder %s565_s21, 1 }
   0xd   : > { %p920_p5 = por %p51_p1, %p50_p0  ;;  %p109_p6 = scmp.eq.s32.totalorder %s566_s22, 1 }
   0xe   : > { %p926_p7 = por %p916_p3, %p56_p2  ;;  %p930_p8 = por %p103_p4, %p50_p0 }
   0xf   : > { %p934_p9 = por %p109_p6, %p56_p2  ;;  %p567_p10 = scmp.ge.s32.totalorder %s844_s20, 1 }
  0x10   : > { %s1075_s26 = scalar_select %p926_p7, 1, 0 }
  0x11   : > { %s1076_s27 = scalar_select %p930_p8, 1, 0 }
  0x12   : > { %s1077_s28 = scalar_select %p934_p9, 1, 0 }
  0x13   : > { %p168_p11 = scmp.lt.s32.totalorder %s844_s20, 3  ;;  %s846_s30 = smov [#allocation5]  }
  0x14   : > { %s181_s5 = sshll.u32 %s846_s30, 4  ;;  %p642_p1 = scmp.lt.s32.totalorder %s844_s20, 2  ;;  %s182_s5 = int_to_ptr.vmem [resolvable:$true] %s181_s5 }
  0x15   : > { %p941_p13 = pnand %p567_p10, %p168_p11  ;;  %s34_s8 = sadd.s32 1, %s840_s19 }
  0x16   : > { %p950_p4 = pnand %p642_p1, %p920_p5  ;;  %p36_p6 = scmp.ge.s32.totalorder %s34_s8, 2 }
  0x17   : > { %p629_p0 = pneg %p941_p13  ;;  %s192_s9 = sand.u32 1, %s832_s17  }
  0x18   : > { %s717_s10 = scalar_lea.vmem %s182_s5, 64  ;;  %p725_p8 = scmp.lt.s32.totalorder %s182_s5, %s182_s5 }
  0x19   : > { %p956_p2 = pnand %p629_p0, %p916_p3  ;;  %p718_p11 = scmp.ne.s32.totalorder %s182_s5, %s717_s10 }
  0x1a   : > { %p726_p5 = scmp.lt.s32.totalorder %s717_s10, %s717_s10 }
  0x1b   : > { %p708_p10 = pneg %p956_p2 }
  0x1c   : > { %p727_p1 = por %p726_p5, %p725_p8 }
  0x1d   : > { %p720_p12 = pnand %p718_p11, %p708_p10 }
  0x1f   : > { %p721_p9 = pneg %p720_p12 }
  0x21   : > { %p728_p7 = pnand %p727_p1, %p721_p9 }
  0x23   : > { %731 = shalt.err (!%p728_p7)
}
  0x24   : > { %s1081_s1 = sld [smem:[#allocation12_spill]]  ;;  %s1094_s8 = smov (%p36_p6, %s34_s8), 0 }
  0x25   : > { %1082 = sst [smem:[#allocation11_spill]] %s1094_s8  ;;  %s570_s13 = sshll.u32 %s192_s9, 6 }
  0x26   : > { %s38_s14 = ssub.s32 %s840_s19, %s1094_s8  ;;  %s591_s21 = sshll.u32 %s840_s19, 10 }
  0x27   : > { %p41_p12 = scmp.eq.s32.totalorder %s38_s14, 0  ;;  %s204_s30 = scalar_lea.hbm %s1064_s0, %s591_s21 }
  0x28   : > { %s196_s7 = scalar_lea.vmem [#allocation2], %s570_s13  ;;  %s193_s12 = scalar_lea.sflag [#allocation3], %s192_s9 }
  0x29   : > { %s205_s10 = sshll.u32 %s196_s7, 4  ;;  %p734_p7 = pneg %p950_p4  ;;  %s206_s10 = int_to_ptr.vmem [resolvable:$true] %s205_s10 }
  0x2a   : > { %632 = dma.hbm_to_vmem [thread:$0]  (!%p956_p2), %s1081_s1, 64, %s182_s5, [#allocation6]  }
  0x2b   : > { %s980_s11 = scalar_select %p41_p12, %s832_s17, %s43_s23  }
  0x2c   : > { %s745_s5 = scalar_lea.vmem %s206_s10, 1024  ;;  %s847_s1 = smov [#allocation2]  }
  0x2d   : > { %p746_p8 = scmp.ne.s32.totalorder %s206_s10, %s745_s5  ;;  %s750_s14 = sshll.u32 %s847_s1, 4  ;;  %s751_s14 = int_to_ptr.vmem [resolvable:$false] %s750_s14 }
  0x2e   : > { %s752_s8 = scalar_lea.vmem %s751_s14, 2048  ;;  %p753_p2 = scmp.lt.s32.totalorder %s206_s10, %s751_s14 }
  0x2f   : > { %p748_p9 = pnand %p746_p8, %p734_p7  ;;  %p754_p6 = scmp.lt.s32.totalorder %s752_s8, %s745_s5 }
  0x31   : > { %p749_p0 = pneg %p748_p9  ;;  %p755_p10 = por %p754_p6, %p753_p2 }
  0x33   : > { %p756_p11 = pnand %p755_p10, %p749_p0 }
  0x35   : > { %759 = shalt.err (!%p756_p11)
}
  0x36   : > { %s848_s13 = smov 64   ;;  %s849_s23 = smov 4  }
  0x37   : > { %636 = dma.hbm_to_vmem [thread:$0]  (!%p950_p4), %s204_s30, 1024, %s206_s10, %s193_s12, %s848_s13, %s848_s13, %s849_s23  }
  0x38   : > { %217 = sbr.rel (%p941_p13) target bundleno = 467 (0x1d3), region = 28  ;;  %s989_s9 = sand.u32 (!%p941_p13), 1, %s828_s16  }
  0x39   : > { %s574_s1 = sshll.u32 (!%p941_p13), %s989_s9, 6  ;;  %s220_s21 = scalar_lea.sflag (!%p941_p13), [#allocation3], %s989_s9 }
  0x3a   : > { %s223_s8 = scalar_lea.vmem (!%p941_p13), [#allocation2], %s574_s1  ;;  %p1083_p5 = scmp.ne.s32.totalorder (!%p941_p13), %s1075_s26, 0 }
  0x3d   : > { %811 = dma.done.wait (%p1083_p5), %s220_s21, 1024  }
  0x3e   : > { %813 = vsyncadd (%p1083_p5), %s220_s21, 4294966272 }
  0x3f   : > { %815 = dma.done.wait (%p916_p3), [#allocation6], 64  }
  0x40   : > { %817 = vsyncadd (%p916_p3), [#allocation6], 4294967232  ;;  %v850_v0 = vmov 0.0   ;;  %vm851_vm0 = vmmov 0   ;;  %v698_v1 = vld [vmem:[%s223_s8 + $0x38] sm:$0xff]   ;;  %v699_v2 = vld [vmem:[%s223_s8 + $0x30] sm:$0xff]  }
  0x41   : > { %601 = vmatprep.subr.bf16.mxu0 %v850_v0  ;;  %617 = vmatprep.mubr.msk.bf16.mxu0 %vm851_vm0, %v850_v0  ;;  %v700_v3 = vld [vmem:[%s223_s8 + $0x28] sm:$0xff]   ;;  %v701_v4 = vld [vmem:[%s223_s8 + $0x20] sm:$0xff]   ;;  %v702_v5 = vld [vmem:[%s223_s8 + $0x18] sm:$0xff]   ;;  %p261_p3 = scmp.lt.s32.totalorder %s836_s18, 1  ;;  %vm274_vm1 = vcmask 7168   ;;  %s576_s25 = sshll.u32 %s989_s9, 2 }
  0x42   : > { %602 = vmatpush3.bf16.xpose.msra.mxu0 %v698_v1  ;;  %v703_v6 = vld [vmem:[%s223_s8 + $0x10] sm:$0xff]   ;;  %v704_v7 = vld [vmem:[%s223_s8 + $0x8] sm:$0xff]   ;;  %v705_v8 = vld [vmem:[%s223_s8] sm:$0xff]   ;;  %s247_s30 = scalar_lea.vmem [#allocation7], %s576_s25  ;;  %s588_s5 = sshll.u32 %s836_s18, 6 }
  0x43   : > { %603 = vmatprep.subr.bf16.mxu0 %v850_v0  ;;  %v277_v9 = vld [vmem:[#allocation5] sm:$0xf]  ;;  %s262_s24 = scalar_select %p261_p3, %s836_s18, 1 }
  0x44   : > { %s419_s14 = sshll.u32 %s247_s30, 4  ;;  %s417_s1 = scalar_lea.hbm %s1066_s2, %s588_s5  ;;  %s420_s14 = int_to_ptr.vmem [resolvable:$true] %s419_s14 }
  0x45   : > { %s577_s26 = sshll.u32 %s262_s24, 3  ;;  %s397_s21 = scalar_lea.sflag [#allocation4], %s989_s9 }
  0x46   : > { %s1006_s22 = scalar_lea.vmem %s1067_s3, %s577_s26  ;;  %s1014_s12 = scalar_lea.vmem %s1068_s4, %s577_s26 }
  0x47   : > { %275 = vst.msk [vmem:[%s1006_s22] sm:$0xff] %vm274_vm1, %v850_v0  ;;  %276 = vst.msk [vmem:[%s1014_s12] sm:$0xff] %vm274_vm1, %v850_v0  ;;  %s760_s8 = scalar_lea.vmem %s420_s14, 64  ;;  %p1084_p4 = scmp.ne.s32.totalorder %s1076_s27, 0 }
  0x48   : > { %p761_p13 = scmp.ne.s32.totalorder %s420_s14, %s760_s8  ;;  %s852_s24 = smov [#allocation7]  }
  0x49   : > { %s764_s29 = sshll.u32 %s852_s24, 4  ;;  %s765_s29 = int_to_ptr.vmem [resolvable:$false] %s764_s29 }
  0x4a   : > { %604 = vmatpush3.bf16.xpose.msra.mxu0 %v699_v2  ;;  %p762_p1 = pnand %p761_p13, %p1084_p4  ;;  %s766_s26 = scalar_lea.vmem %s765_s29, 128 }
  0x4b   : > { %605 = vmatprep.subr.bf16.mxu0 %v850_v0  ;;  %p767_p7 = scmp.lt.s32.totalorder %s420_s14, %s765_s29  ;;  %p768_p8 = scmp.lt.s32.totalorder %s766_s26, %s760_s8 }
  0x4c   : > { %p763_p12 = pneg %p762_p1 }
  0x4d   : > { %p769_p9 = por %p768_p8, %p767_p7 }
  0x4f   : > { %p770_p0 = pnand %p769_p9, %p763_p12 }
  0x52   : > { %606 = vmatpush3.bf16.xpose.msra.mxu0 %v700_v3 }
  0x53   : > { %607 = vmatprep.subr.bf16.mxu0 %v850_v0 }
  0x5a   : > { %608 = vmatpush3.bf16.xpose.msra.mxu0 %v701_v4 }
  0x5b   : > { %609 = vmatprep.subr.bf16.mxu0 %v850_v0 }
  0x62   : > { %610 = vmatpush3.bf16.xpose.msra.mxu0 %v702_v5 }
  0x63   : > { %611 = vmatprep.subr.bf16.mxu0 %v850_v0 }
  0x6a   : > { %612 = vmatpush3.bf16.xpose.msra.mxu0 %v703_v6 }
  0x6b   : > { %613 = vmatprep.subr.bf16.mxu0 %v850_v0 }
  0x72   : > { %614 = vmatpush3.bf16.xpose.msra.mxu0 %v704_v7 }
  0x73   : > { %615 = vmatprep.subr.bf16.mxu0 %v850_v0 }
  0x7a   : > { %616 = vmatpush3.bf16.xpose.msra.mxu0 %v705_v8 }
  0x81   : > { %618 = vmatmul.mubr.bf16.vlgmr.msra.gmra.mxu0 %v277_v9 }
 0x141   : > { %v376_v10 = vpop.f32.mrf.mxu0 }
 0x142   : > { %v382_v11 = vpack.c.bf16 %v376_v10, %v376_v10  ;;  %385 = vadd.xlane.f32.xlu0 %v376_v10  ;;  %v391_v13 = vmul.f32 %v376_v10, %v376_v10 }
 0x143   : > { %v619_v12 = vpop.f32.mrf.mxu0 }
 0x144   : > { %383 = vst [vmem:[%s247_s30] sm:$0xf] %v382_v11 }
 0x145   : > { %v379_v14 = vpop.f32.mrf.mxu0 }
 0x146   : > { %392 = vadd.xlane.f32.xlu0 %v391_v13 }
 0x147   : > { %v620_v15 = vpop.f32.mrf.mxu0 }
 0x148   : > { %773 = shalt.err (!%p770_p0)
}
 0x149   : > { %s774_s18 = scalar_lea.hbm %s417_s1, 64  ;;  %s778_s25 = scalar_lea.hbm %s1066_s2, 128 }
 0x14a   : > { %p775_p2 = scmp.ne.s32.totalorder %s417_s1, %s774_s18  ;;  %p779_p11 = scmp.lt.s32.totalorder %s417_s1, %s1066_s2 }
 0x14b   : > { %p780_p5 = scmp.lt.s32.totalorder %s778_s25, %s774_s18 }
 0x14c   : > { %p776_p6 = pnand %p775_p2, %p1084_p4 }
 0x14d   : > { %p781_p3 = por %p780_p5, %p779_p11 }
 0x14e   : > { %p777_p10 = pneg %p776_p6 }
 0x150   : > { %p782_p13 = pnand %p781_p3, %p777_p10 }
 0x152   : > { %785 = shalt.err (!%p782_p13)
}
 0x153   : > { %627 = dma.vmem_to_hbm [thread:$0]  (%p1084_p4), %s420_s14, 64, %s417_s1, %s397_s21   ;;  %v384_v16 = vld [vmem:[%s1006_s22] sm:$0xff] }
 0x154   : > { %v390_v19 = vld [vmem:[%s1014_s12] sm:$0xff] }
 0x1cb   : > { %v386_v17 = vpop.xlane.xlu0 %385 }
 0x1cc   : > { %v387_v18 = vadd.f32 %v386_v17, %v384_v16 }
 0x1ce   : > { %389 = vst.msk [vmem:[%s1006_s22] sm:$0xff] %vm274_vm1, %v387_v18 }
 0x1cf   : > { %v393_v20 = vpop.xlane.xlu0 %392 }
 0x1d0   : > { %v394_v21 = vadd.f32 %v393_v20, %v390_v19 }
 0x1d2   : > { %395 = vst.msk [vmem:[%s1014_s12] sm:$0xff] %vm274_vm1, %v394_v21 }
 0x1d3 PF: > { %s437_s27 = sand.u32 1, %s824_s15   ;;  %p1085_p1 = scmp.ne.s32.totalorder %s1077_s28, 0 }
 0x1d4   : > { %p1086_p12 = scmp.ge.s32.totalorder %s844_s20, 2  ;;  %s438_s10 = scalar_lea.sflag [#allocation4], %s437_s27 }
 0x1d6   : > { %p638_p7 = pnand %p1086_p12, %p1085_p1 }
 0x1d8   : > { %p639_p8 = pneg %p638_p7 }
 0x1da   : > { %819 = dma.done.wait (%p639_p8), %s438_s10, 64  }
 0x1db   : > { %821 = vsyncadd (%p639_p8), %s438_s10, 4294967232  ;;  %s22_s20 = sadd.s32 1, %s844_s20   ;;  %s1087_s22 = sld [smem:[#allocation11_spill]] }
 0x1dc   : > { %p19_p4 = scmp.ge.s32.totalorder %s22_s20, 4   ;;  %s1088_s15 = smov %s828_s16 }
 0x1dd   : > { %s1089_s16 = smov %s832_s17  ;;  %s1090_s17 = smov %s980_s11 }
 0x1de   : > { %s1091_s18 = smov %s840_s19  ;;  %21 = sbr.rel (!%p19_p4) target bundleno = 9 (0x9), region = 105 }
 0x1e1   : > { %s1092_s19 = smov %s1087_s22 }
 0x1e3   :  { %457 = vsyncpa [#allocation3], 1 }
 0x1e4   :  { %459 = vsyncpa [#allocation3 + $0x1], 1 }
 0x1e5   :  { %460 = vsyncpa [#allocation6], 1 }
 0x1e6   :  { %461 = vsyncpa [#allocation4], 1 }
 0x1e7   :  { %463 = vsyncpa [#allocation4 + $0x1], 1 }

</bundles_post_ra>
